<compile_context>
chip_gen: v5e
topology: v5e:2x2
jax: 0.10.0
libtpu: 0.0.40
codegen_flags: <defaults>
</compile_context>

<pallas_src>
import jax
import jax.numpy as jnp
from jax.experimental import pallas as pl
from jax.experimental.pallas import tpu as pltpu

NEG_SLOPE = 0.01   # F.leaky_relu default negative slope
LANE = 128         # TPU lane width  (last dim padding target)
SUBLANE = 8        # TPU sublane count (second-last dim padding target)

_VMEM = pl.BlockSpec(memory_space=pltpu.MemorySpace.VMEM)


# ---------------------------------------------------------------------------
# Small helpers
# ---------------------------------------------------------------------------
def _round_up(x, m):
    return ((x + m - 1) // m) * m


def _pad2d(x, rows, cols):
    r, c = x.shape
    return jnp.zeros((rows, cols), x.dtype).at[:r, :c].set(x)


def xavier_uniform(key, shape):
    fan_out, fan_in = shape[0], shape[1]
    bound = jnp.sqrt(6.0 / (fan_in + fan_out))
    return jax.random.uniform(key, shape, jnp.float32, -bound, bound)


# ---------------------------------------------------------------------------
# Fused forward kernel: whole HeteroRGCN forward in one pallas_call.
# Inputs (all VMEM, all padded):
#   [0:E)            A_norm_e            (n_dst_pad, n_src_pad)
#   [E:E+T)          node features       (n_pad,     f_in_pad)   order = ntypes
#   then per layer, per etype:  W (in_pad, out_pad), b (1, out_pad)
#   then final:                 Wf (hid_pad, out_pad), bf (1, out_pad)
# Output: (n_user_pad, out_pad)   — lane-dense (128-wide) unmasked stores.
# ---------------------------------------------------------------------------
def _make_fused_kernel(ntypes, canonical_etypes, n_layers):
    E = len(canonical_etypes)
    T = len(ntypes)

    def kernel(*refs):
        adj = [refs[i][...] for i in range(E)]
        h = {nt: refs[E + t][...] for t, nt in enumerate(ntypes)}

        idx = E + T
        layer_refs = []
        for _ in range(n_layers):
            per = []
            for _ in range(E):
                per.append((refs[idx], refs[idx + 1]))
                idx += 2
            layer_refs.append(per)
        wf_ref, bf_ref = refs[idx], refs[idx + 1]
        out_ref = refs[idx + 2]

        # Graph layers (fully unrolled — tiny static shapes).
        for li in range(n_layers):
            if li != 0:
                h = {k: jnp.where(v >= 0, v, NEG_SLOPE * v) for k, v in h.items()}
            new_h = {}
            for ei, (src, _etype, dst) in enumerate(canonical_etypes):
                if src not in h:
                    continue
                w_ref, b_ref = layer_refs[li][ei]
                # Wh = X_src @ W_e (pre-transposed) + b_e
                wh = jnp.dot(h[src], w_ref[...],
                             preferred_element_type=jnp.float32) + b_ref[...]
                # mean over incoming e-edges == (D_e^{-1} A_e) @ Wh
                msg = jnp.dot(adj[ei], wh, preferred_element_type=jnp.float32)
                # cross-type 'sum' reducer, accumulated in-register / VMEM
                new_h[dst] = msg if dst not in new_h else new_h[dst] + msg
            h = new_h

        # Final Linear on 'User' features.
        out_ref[...] = (
            jnp.dot(h["User"], wf_ref[...], preferred_element_type=jnp.float32)
            + bf_ref[...]
        )

    return kernel


# ---------------------------------------------------------------------------
# Parameter construction: weights pre-transposed to (in, out), zero-padded to
# lane-dense shapes ONCE here (no per-call transposes / reshapes).
# Note: requires in_size == embedding_size (same implicit assumption as the
# PyTorch module's first HeteroRGCNLayer).
# ---------------------------------------------------------------------------
def init_params(key, ntype_dict, etypes, in_size, hidden_size, out_size,
                n_layers, embedding_size):
    ntypes = list(ntype_dict.keys())
    n_pad = {nt: _round_up(n, SUBLANE) for nt, n in ntype_dict.items()}
    f_in_pad = _round_up(in_size, LANE)
    f_hid_pad = _round_up(hidden_size, LANE)
    f_out_pad = _round_up(out_size, LANE)

    # Embeddings for every non-User node type (xavier), padded.
    embed_pad = {}
    for nt in ntypes:
        if nt == "User":
            continue
        key, k = jax.random.split(key)
        emb = xavier_uniform(k, (ntype_dict[nt], in_size))
        embed_pad[nt] = _pad2d(emb, n_pad[nt], f_in_pad)

    # Per-layer, per-etype Linear params (PyTorch init style), stored padded
    # and pre-transposed to (in_pad, out_pad).
    layer_sizes = [(embedding_size, hidden_size, f_in_pad, f_hid_pad)] + [
        (hidden_size, hidden_size, f_hid_pad, f_hid_pad)
        for _ in range(n_layers - 1)
    ]
    layer_params = []
    for (isz, osz, ipad, opad) in layer_sizes:
        per = []
        for _ in etypes:
            key, kw, kb = jax.random.split(key, 3)
            w = xavier_uniform(kw, (osz, isz))                  # PyTorch (out, in)
            b = jax.random.uniform(kb, (osz,), jnp.float32, -0.05, 0.05)
            w_pad = jnp.zeros((ipad, opad), jnp.float32).at[:isz, :osz].set(w.T)
            b_pad = jnp.zeros((1, opad), jnp.float32).at[0, :osz].set(b)
            per.append((w_pad, b_pad))
        layer_params.append(per)

    key, kw, kb = jax.random.split(key, 3)
    wf = xavier_uniform(kw, (out_size, hidden_size))
    bf = jax.random.uniform(kb, (out_size,), jnp.float32, -0.05, 0.05)
    final_w = jnp.zeros((f_hid_pad, f_out_pad), jnp.float32).at[
        :hidden_size, :out_size].set(wf.T)
    final_b = jnp.zeros((1, f_out_pad), jnp.float32).at[0, :out_size].set(bf)

    return {
        "ntypes": ntypes,
        "n_pad": n_pad,
        "f_in_pad": f_in_pad,
        "f_out_pad": f_out_pad,
        "out_size": out_size,
        "embed_pad": embed_pad,
        "layer_params": layer_params,
        "final": (final_w, final_b),
    }


def build_graph(key, ntype_dict, canonical_etypes, edge_prob=0.4):
    """Dense degree-normalized adjacency per canonical etype (n_dst, n_src),
    zero-padded to sublane multiples. Rows with zero in-degree stay all-zero
    (matches DGL mean semantics: no message, no bias)."""
    n_pad = {nt: _round_up(n, SUBLANE) for nt, n in ntype_dict.items()}
    adj_pad = {}
    for (src, etype, dst) in canonical_etypes:
        key, k = jax.random.split(key)
        n_src, n_dst = ntype_dict[src], ntype_dict[dst]
        adj = jax.random.bernoulli(k, edge_prob, (n_dst, n_src)).astype(jnp.float32)
        deg = adj.sum(axis=1, keepdims=True)
        inv_deg = jnp.where(deg > 0, 1.0 / jnp.maximum(deg, 1.0), 0.0)
        adj_pad[(src, etype, dst)] = _pad2d(adj * inv_deg, n_pad[dst], n_pad[src])
    return {"canonical_etypes": canonical_etypes, "adj_pad": adj_pad}


# ---------------------------------------------------------------------------
# Forward pass: one fused pallas_call.
# ---------------------------------------------------------------------------
def hetero_rgcn_forward(params, graph, features):
    ntypes = params["ntypes"]
    canon = graph["canonical_etypes"]
    n_layers = len(params["layer_params"])
    n_user = features.shape[0]
    n_user_pad = params["n_pad"]["User"]

    feats_pad = _pad2d(features.astype(jnp.float32), n_user_pad, params["f_in_pad"])
    feat_list = [feats_pad if nt == "User" else params["embed_pad"][nt]
                 for nt in ntypes]

    flat_inputs = [graph["adj_pad"][ce] for ce in canon] + feat_list
    for layer in params["layer_params"]:
        for (w_pad, b_pad) in layer:
            flat_inputs.extend((w_pad, b_pad))
    flat_inputs.extend(params["final"])

    kernel = _make_fused_kernel(ntypes, canon, n_layers)
    out_pad = pl.pallas_call(
        kernel,
        out_shape=jax.ShapeDtypeStruct((n_user_pad, params["f_out_pad"]), jnp.float32),
        in_specs=[_VMEM] * len(flat_inputs),
        out_specs=_VMEM,
    )(*flat_inputs)

    # Strip lane/sublane padding outside the kernel.
    return out_pad[:n_user, :params["out_size"]]


# ---------------------------------------------------------------------------
if __name__ == "__main__":
    ntype_dict = {"User": 8, "Merchant": 6, "Device": 5}
    canonical_etypes = [
        ("User", "user_to_merchant", "Merchant"),
        ("Merchant", "merchant_to_user", "User"),
        ("User", "user_to_device", "Device"),
        ("Device", "device_to_user", "User"),
    ]
    etypes = [e for (_, e, _) in canonical_etypes]
    in_size = 16          # == embedding_size so the first layer is shape-consistent
    embedding_size = 16
    hidden_size = 32
    out_size = 4
    n_layers = 2          # -> 2 HeteroRGCNLayers + final Linear

    root = jax.random.PRNGKey(0)
    k_params, k_graph, k_feat = jax.random.split(root, 3)

    params = init_params(k_params, ntype_dict, etypes, in_size, hidden_size,
                         out_size, n_layers, embedding_size)
    graph = build_graph(k_graph, ntype_dict, canonical_etypes)
    features = jax.random.normal(k_feat, (ntype_dict["User"], in_size), jnp.float32)

    out = hetero_rgcn_forward(params, graph, features)
    out = jax.block_until_ready(out)

    assert out.shape == (ntype_dict["User"], out_size)
    assert bool(jnp.all(jnp.isfinite(out)))
    print("KERNEL_OK")
</pallas_src>

<mosaic_0001>
module attributes {stable_mosaic.version = 11 : i64} {
  func.func @kernel(%arg0: memref<8x8xf32, #tpu.memory_space<vmem>>, %arg1: memref<8x8xf32, #tpu.memory_space<vmem>>, %arg2: memref<8x8xf32, #tpu.memory_space<vmem>>, %arg3: memref<8x8xf32, #tpu.memory_space<vmem>>, %arg4: memref<8x128xf32, #tpu.memory_space<vmem>>, %arg5: memref<8x128xf32, #tpu.memory_space<vmem>>, %arg6: memref<8x128xf32, #tpu.memory_space<vmem>>, %arg7: memref<128x128xf32, #tpu.memory_space<vmem>>, %arg8: memref<1x128xf32, #tpu.memory_space<vmem>>, %arg9: memref<128x128xf32, #tpu.memory_space<vmem>>, %arg10: memref<1x128xf32, #tpu.memory_space<vmem>>, %arg11: memref<128x128xf32, #tpu.memory_space<vmem>>, %arg12: memref<1x128xf32, #tpu.memory_space<vmem>>, %arg13: memref<128x128xf32, #tpu.memory_space<vmem>>, %arg14: memref<1x128xf32, #tpu.memory_space<vmem>>, %arg15: memref<128x128xf32, #tpu.memory_space<vmem>>, %arg16: memref<1x128xf32, #tpu.memory_space<vmem>>, %arg17: memref<128x128xf32, #tpu.memory_space<vmem>>, %arg18: memref<1x128xf32, #tpu.memory_space<vmem>>, %arg19: memref<128x128xf32, #tpu.memory_space<vmem>>, %arg20: memref<1x128xf32, #tpu.memory_space<vmem>>, %arg21: memref<128x128xf32, #tpu.memory_space<vmem>>, %arg22: memref<1x128xf32, #tpu.memory_space<vmem>>, %arg23: memref<128x128xf32, #tpu.memory_space<vmem>>, %arg24: memref<1x128xf32, #tpu.memory_space<vmem>>, %arg25: memref<8x128xf32, #tpu.memory_space<vmem>>) attributes {dimension_semantics = [], scalar_prefetch = 0 : i64, scratch_operands = 0 : i64, tpu.core_type = #tpu.core_type<tc>} {
    %c0 = arith.constant 0 : index
    %c0_0 = arith.constant 0 : index
    %0 = vector.load %arg0[%c0, %c0_0] : memref<8x8xf32, #tpu.memory_space<vmem>>, vector<8x8xf32>
    %c0_1 = arith.constant 0 : index
    %c0_2 = arith.constant 0 : index
    %1 = vector.load %arg1[%c0_1, %c0_2] : memref<8x8xf32, #tpu.memory_space<vmem>>, vector<8x8xf32>
    %c0_3 = arith.constant 0 : index
    %c0_4 = arith.constant 0 : index
    %2 = vector.load %arg2[%c0_3, %c0_4] : memref<8x8xf32, #tpu.memory_space<vmem>>, vector<8x8xf32>
    %c0_5 = arith.constant 0 : index
    %c0_6 = arith.constant 0 : index
    %3 = vector.load %arg3[%c0_5, %c0_6] : memref<8x8xf32, #tpu.memory_space<vmem>>, vector<8x8xf32>
    %c0_7 = arith.constant 0 : index
    %c0_8 = arith.constant 0 : index
    %4 = vector.load %arg4[%c0_7, %c0_8] : memref<8x128xf32, #tpu.memory_space<vmem>>, vector<8x128xf32>
    %c0_9 = arith.constant 0 : index
    %c0_10 = arith.constant 0 : index
    %5 = vector.load %arg7[%c0_9, %c0_10] : memref<128x128xf32, #tpu.memory_space<vmem>>, vector<128x128xf32>
    %cst = arith.constant dense<0.000000e+00> : vector<8x128xf32>
    %6 = tpu.matmul %4, %5, %cst {dimension_numbers = #tpu.dot_dimension_numbers<[1], [0], [0], [1], [0, 0, 1, 1], [], []>} : vector<8x128xf32>, vector<128x128xf32>, vector<8x128xf32> -> vector<8x128xf32>
    %c0_11 = arith.constant 0 : index
    %c0_12 = arith.constant 0 : index
    %7 = vector.load %arg8[%c0_11, %c0_12] : memref<1x128xf32, #tpu.memory_space<vmem>>, vector<1x128xf32>
    %8 = vector.broadcast %7 : vector<1x128xf32> to vector<8x128xf32>
    %9 = arith.addf %6, %8 : vector<8x128xf32>
    %cst_13 = arith.constant dense<0.000000e+00> : vector<8x128xf32>
    %10 = tpu.matmul %0, %9, %cst_13 {dimension_numbers = #tpu.dot_dimension_numbers<[1], [0], [0], [1], [0, 0, 1, 1], [], []>} : vector<8x8xf32>, vector<8x128xf32>, vector<8x128xf32> -> vector<8x128xf32>
    %c0_14 = arith.constant 0 : index
    %c0_15 = arith.constant 0 : index
    %11 = vector.load %arg11[%c0_14, %c0_15] : memref<128x128xf32, #tpu.memory_space<vmem>>, vector<128x128xf32>
    %cst_16 = arith.constant dense<0.000000e+00> : vector<8x128xf32>
    %12 = tpu.matmul %4, %11, %cst_16 {dimension_numbers = #tpu.dot_dimension_numbers<[1], [0], [0], [1], [0, 0, 1, 1], [], []>} : vector<8x128xf32>, vector<128x128xf32>, vector<8x128xf32> -> vector<8x128xf32>
    %c0_17 = arith.constant 0 : index
    %c0_18 = arith.constant 0 : index
    %13 = vector.load %arg12[%c0_17, %c0_18] : memref<1x128xf32, #tpu.memory_space<vmem>>, vector<1x128xf32>
    %14 = vector.broadcast %13 : vector<1x128xf32> to vector<8x128xf32>
    %15 = arith.addf %12, %14 : vector<8x128xf32>
    %cst_19 = arith.constant dense<0.000000e+00> : vector<8x128xf32>
    %16 = tpu.matmul %2, %15, %cst_19 {dimension_numbers = #tpu.dot_dimension_numbers<[1], [0], [0], [1], [0, 0, 1, 1], [], []>} : vector<8x8xf32>, vector<8x128xf32>, vector<8x128xf32> -> vector<8x128xf32>
    %cst_20 = arith.constant 0.000000e+00 : f32
    %17 = vector.broadcast %cst_20 : f32 to vector<8x128xf32>
    %18 = arith.cmpf oge, %10, %17 : vector<8x128xf32>
    %cst_21 = arith.constant 0.00999999977 : f32
    %19 = vector.broadcast %cst_21 : f32 to vector<8x128xf32>
    %20 = arith.mulf %19, %10 : vector<8x128xf32>
    %21 = arith.select %18, %10, %20 : vector<8x128xi1>, vector<8x128xf32>
    %cst_22 = arith.constant 0.000000e+00 : f32
    %22 = vector.broadcast %cst_22 : f32 to vector<8x128xf32>
    %23 = arith.cmpf oge, %16, %22 : vector<8x128xf32>
    %cst_23 = arith.constant 0.00999999977 : f32
    %24 = vector.broadcast %cst_23 : f32 to vector<8x128xf32>
    %25 = arith.mulf %24, %16 : vector<8x128xf32>
    %26 = arith.select %23, %16, %25 : vector<8x128xi1>, vector<8x128xf32>
    %c0_24 = arith.constant 0 : index
    %c0_25 = arith.constant 0 : index
    %27 = vector.load %arg17[%c0_24, %c0_25] : memref<128x128xf32, #tpu.memory_space<vmem>>, vector<128x128xf32>
    %cst_26 = arith.constant dense<0.000000e+00> : vector<8x128xf32>
    %28 = tpu.matmul %21, %27, %cst_26 {dimension_numbers = #tpu.dot_dimension_numbers<[1], [0], [0], [1], [0, 0, 1, 1], [], []>} : vector<8x128xf32>, vector<128x128xf32>, vector<8x128xf32> -> vector<8x128xf32>
    %c0_27 = arith.constant 0 : index
    %c0_28 = arith.constant 0 : index
    %29 = vector.load %arg18[%c0_27, %c0_28] : memref<1x128xf32, #tpu.memory_space<vmem>>, vector<1x128xf32>
    %30 = vector.broadcast %29 : vector<1x128xf32> to vector<8x128xf32>
    %31 = arith.addf %28, %30 : vector<8x128xf32>
    %cst_29 = arith.constant dense<0.000000e+00> : vector<8x128xf32>
    %32 = tpu.matmul %1, %31, %cst_29 {dimension_numbers = #tpu.dot_dimension_numbers<[1], [0], [0], [1], [0, 0, 1, 1], [], []>} : vector<8x8xf32>, vector<8x128xf32>, vector<8x128xf32> -> vector<8x128xf32>
    %c0_30 = arith.constant 0 : index
    %c0_31 = arith.constant 0 : index
    %33 = vector.load %arg21[%c0_30, %c0_31] : memref<128x128xf32, #tpu.memory_space<vmem>>, vector<128x128xf32>
    %cst_32 = arith.constant dense<0.000000e+00> : vector<8x128xf32>
    %34 = tpu.matmul %26, %33, %cst_32 {dimension_numbers = #tpu.dot_dimension_numbers<[1], [0], [0], [1], [0, 0, 1, 1], [], []>} : vector<8x128xf32>, vector<128x128xf32>, vector<8x128xf32> -> vector<8x128xf32>
    %c0_33 = arith.constant 0 : index
    %c0_34 = arith.constant 0 : index
    %35 = vector.load %arg22[%c0_33, %c0_34] : memref<1x128xf32, #tpu.memory_space<vmem>>, vector<1x128xf32>
    %36 = vector.broadcast %35 : vector<1x128xf32> to vector<8x128xf32>
    %37 = arith.addf %34, %36 : vector<8x128xf32>
    %cst_35 = arith.constant dense<0.000000e+00> : vector<8x128xf32>
    %38 = tpu.matmul %3, %37, %cst_35 {dimension_numbers = #tpu.dot_dimension_numbers<[1], [0], [0], [1], [0, 0, 1, 1], [], []>} : vector<8x8xf32>, vector<8x128xf32>, vector<8x128xf32> -> vector<8x128xf32>
    %39 = arith.addf %32, %38 : vector<8x128xf32>
    %c0_36 = arith.constant 0 : index
    %c0_37 = arith.constant 0 : index
    %40 = vector.load %arg23[%c0_36, %c0_37] : memref<128x128xf32, #tpu.memory_space<vmem>>, vector<128x128xf32>
    %cst_38 = arith.constant dense<0.000000e+00> : vector<8x128xf32>
    %41 = tpu.matmul %39, %40, %cst_38 {dimension_numbers = #tpu.dot_dimension_numbers<[1], [0], [0], [1], [0, 0, 1, 1], [], []>} : vector<8x128xf32>, vector<128x128xf32>, vector<8x128xf32> -> vector<8x128xf32>
    %c0_39 = arith.constant 0 : index
    %c0_40 = arith.constant 0 : index
    %42 = vector.load %arg24[%c0_39, %c0_40] : memref<1x128xf32, #tpu.memory_space<vmem>>, vector<1x128xf32>
    %43 = vector.broadcast %42 : vector<1x128xf32> to vector<8x128xf32>
    %44 = arith.addf %41, %43 : vector<8x128xf32>
    %c0_41 = arith.constant 0 : index
    %c0_42 = arith.constant 0 : index
    %45 = vector.load %arg25[%c0_41, %c0_42] : memref<8x128xf32, #tpu.memory_space<vmem>>, vector<8x128xf32>
    tpu.vector_store %arg25[%c0_41, %c0_42], %44 {strides = array<i32>} : memref<8x128xf32, #tpu.memory_space<vmem>>, vector<8x128xf32>,
    return
  }
}

</mosaic_0001>

<bundles_post_ra>
// kernel: tpu_custom_call.1
= control target key start
LH: loop header
LB: loop body
LE: loop exit
PB: predicated region body
PF: predicated region fallthrough
CT: control target
= control target key end

     0   :  { %s1348_s0 = inlined_call_operand.hbm [shape: f32[8,8], index: 0, kind: input, shape index: {}]   ;;  %s1349_s1 = inlined_call_operand.hbm [shape: f32[8,8], index: 1, kind: input, shape index: {}]   ;;  %s1350_s2 = inlined_call_operand.hbm [shape: f32[8,8], index: 2, kind: input, shape index: {}]   ;;  %s1351_s3 = inlined_call_operand.hbm [shape: f32[8,8], index: 3, kind: input, shape index: {}]   ;;  %s1352_s4 = inlined_call_operand.hbm [shape: f32[8,128], index: 4, kind: input, shape index: {}]   ;;  %s1353_s5 = inlined_call_operand.hbm [shape: f32[8,128], index: 5, kind: input, shape index: {}]   ;;  %s1354_s6 = inlined_call_operand.hbm [shape: f32[8,128], index: 6, kind: input, shape index: {}]   ;;  %s1355_s7 = inlined_call_operand.hbm [shape: f32[128,128], index: 7, kind: input, shape index: {}]   ;;  %s1356_s8 = inlined_call_operand.vmem [shape: f32[1,128], index: 8, kind: input, shape index: {}]   ;;  %s1357_s9 = inlined_call_operand.hbm [shape: f32[128,128], index: 9, kind: input, shape index: {}]   ;;  %s1358_s10 = inlined_call_operand.vmem [shape: f32[1,128], index: 10, kind: input, shape index: {}]   ;;  %s1359_s11 = inlined_call_operand.hbm [shape: f32[128,128], index: 11, kind: input, shape index: {}]   ;;  %s1360_s12 = inlined_call_operand.vmem [shape: f32[1,128], index: 12, kind: input, shape index: {}]   ;;  %s1361_s13 = inlined_call_operand.hbm [shape: f32[128,128], index: 13, kind: input, shape index: {}]   ;;  %s1362_s14 = inlined_call_operand.vmem [shape: f32[1,128], index: 14, kind: input, shape index: {}]   ;;  %s1363_s15 = inlined_call_operand.hbm [shape: f32[128,128], index: 15, kind: input, shape index: {}]   ;;  %s1364_s16 = inlined_call_operand.vmem [shape: f32[1,128], index: 16, kind: input, shape index: {}]   ;;  %s1365_s17 = inlined_call_operand.hbm [shape: f32[128,128], index: 17, kind: input, shape index: {}]   ;;  %s1366_s18 = inlined_call_operand.vmem [shape: f32[1,128], index: 18, kind: input, shape index: {}]   ;;  %s1367_s19 = inlined_call_operand.hbm [shape: f32[128,128], index: 19, kind: input, shape index: {}]   ;;  %s1368_s20 = inlined_call_operand.vmem [shape: f32[1,128], index: 20, kind: input, shape index: {}]   ;;  %s1369_s21 = inlined_call_operand.hbm [shape: f32[128,128], index: 21, kind: input, shape index: {}]   ;;  %s1370_s22 = inlined_call_operand.vmem [shape: f32[1,128], index: 22, kind: input, shape index: {}]   ;;  %s1371_s23 = inlined_call_operand.hbm [shape: f32[128,128], index: 23, kind: input, shape index: {}]   ;;  %s1372_s24 = inlined_call_operand.vmem [shape: f32[1,128], index: 24, kind: input, shape index: {}]   ;;  %s1373_s25 = inlined_call_operand.hbm [shape: f32[8,128], index: 25, kind: output, shape index: {}]  }
   0x1   :  { %1374 = sst [smem:[#allocation39_spill]] %s1348_s0 }
   0x2   :  { %1375 = sst [smem:[#allocation40_spill]] %s1349_s1 }
   0x3   :  { %1376 = sst [smem:[#allocation41_spill]] %s1350_s2 }
   0x4   :  { %1377 = sst [smem:[#allocation42_spill]] %s1351_s3 }
   0x5   :  { %1378 = sst [smem:[#allocation43_spill]] %s1352_s4 }
   0x6   :  { %1379 = sst [smem:[#allocation44_spill]] %s1353_s5 }
   0x7   :  { %1380 = sst [smem:[#allocation45_spill]] %s1354_s6 }
   0x8   :  { %1381 = sst [smem:[#allocation46_spill]] %s1355_s7 }
   0x9   :  { %1382 = sst [smem:[#allocation47_spill]] %s1356_s8 }
   0xa   :  { %1383 = sst [smem:[#allocation48_spill]] %s1357_s9 }
   0xb   :  { %30 = vsyncpa [#allocation3], 0 }
   0xc   :  { %31 = vsyncpa [#allocation6], 0 }
   0xd   :  { %32 = vsyncpa [#allocation9], 0 }
   0xe   :  { %33 = vsyncpa [#allocation12], 0 }
   0xf   :  { %34 = vsyncpa [#allocation15], 0 }
  0x10   :  { %35 = vsyncpa [#allocation18], 0 }
  0x11   :  { %36 = vsyncpa [#allocation21], 0 }
  0x12   :  { %37 = vsyncpa [#allocation24], 0 }
  0x13   :  { %38 = vsyncpa [#allocation27], 0  ;;  %s1384_s5 = sld [smem:[#allocation40_spill]] }
  0x19   :  { %s56_s10 = sshll.u32 %s1384_s5, 4  ;;  %s57_s10 = int_to_ptr.hbm [resolvable:$true] %s56_s10 }
  0x1a   :  { %39 = vsyncpa [#allocation4], 0  ;;  %s1102_s0 = smov [#allocation5]   ;;  %s1385_s7 = sld [smem:[#allocation42_spill]] }
  0x1b   :  { %s58_s29 = sshll.u32 %s1102_s0, 4  ;;  %s1103_s14 = smov [#allocation8]   ;;  %s59_s29 = int_to_ptr.vmem [resolvable:$true] %s58_s29 }
  0x1c   :  { %61 = dma.hbm_to_vmem [thread:$0]  %s57_s10, 128, %s59_s29, [#allocation6]  }
  0x1d   :  { %s80_s3 = sshll.u32 %s1103_s14, 4  ;;  %s1386_s16 = sld [smem:[#allocation44_spill]]  ;;  %s81_s3 = int_to_ptr.vmem [resolvable:$true] %s80_s3 }
  0x1e   :  { %s1387_s4 = sld [smem:[#allocation46_spill]]  ;;  %s1104_s28 = smov [#allocation11]  }
  0x1f   :  { %s102_s5 = sshll.u32 %s1104_s28, 4  ;;  %s1105_s10 = smov [#allocation14]   ;;  %s103_s5 = int_to_ptr.vmem [resolvable:$true] %s102_s5 }
  0x20   :  { %s78_s30 = sshll.u32 %s1385_s7, 4  ;;  %s123_s0 = sshll.u32 %s1105_s10, 4  ;;  %s79_s30 = int_to_ptr.hbm [resolvable:$true] %s78_s30  ;;  %s124_s0 = int_to_ptr.vmem [resolvable:$true] %s123_s0 }
  0x21   :  { %83 = dma.hbm_to_vmem [thread:$0]  %s79_s30, 128, %s81_s3, [#allocation9]  }
  0x22   :  { %s1106_s29 = smov 128   ;;  %s1107_s6 = smov 8  }
  0x23   :  { %s100_s1 = sshll.u32 %s1386_s16, 4  ;;  %s151_s30 = sshll.u32 %s1359_s11, 4  ;;  %s101_s1 = int_to_ptr.hbm [resolvable:$true] %s100_s1  ;;  %s152_s30 = int_to_ptr.hbm [resolvable:$true] %s151_s30 }
  0x24   :  { %s121_s20 = sshll.u32 %s1387_s4, 4  ;;  %s1108_s14 = smov [#allocation17]   ;;  %s122_s20 = int_to_ptr.hbm [resolvable:$true] %s121_s20 }
  0x25   :  { %105 = dma.hbm_to_vmem [thread:$0]  %s101_s1, 128, %s103_s5, [#allocation12]  }
  0x26   :  { %129 = dma.hbm_to_vmem [thread:$0]  %s122_s20, 2048, %s124_s0, [#allocation15], %s1106_s29, %s1106_s29, %s1107_s6  }
  0x27   :  { %s153_s3 = sshll.u32 %s1108_s14, 4  ;;  %s181_s16 = sshll.u32 %s1363_s15, 4  ;;  %s154_s3 = int_to_ptr.vmem [resolvable:$true] %s153_s3  ;;  %s182_s16 = int_to_ptr.hbm [resolvable:$true] %s181_s16 }
  0x28   :  { %159 = dma.hbm_to_vmem [thread:$0]  %s152_s30, 2048, %s154_s3, [#allocation18], %s1106_s29, %s1106_s29, %s1107_s6  }
  0x29   :  { %s1109_s1 = smov [#allocation20]   ;;  %s211_s20 = sshll.u32 %s1367_s19, 4  ;;  %s212_s20 = int_to_ptr.hbm [resolvable:$true] %s211_s20 }
  0x2a   :  { %s183_s9 = sshll.u32 %s1109_s1, 4  ;;  %s1388_s15 = sld [smem:[#allocation39_spill]]  ;;  %s184_s9 = int_to_ptr.vmem [resolvable:$true] %s183_s9 }
  0x2b   :  { %189 = dma.hbm_to_vmem [thread:$0]  %s182_s16, 2048, %s184_s9, [#allocation21], %s1106_s29, %s1106_s29, %s1107_s6  }
  0x2c   :  { %s1110_s10 = smov [#allocation23]   ;;  %s1111_s2 = smov [#allocation2]  }
  0x2d   :  { %s213_s0 = sshll.u32 %s1110_s10, 4  ;;  %s47_s19 = sshll.u32 %s1111_s2, 4  ;;  %s214_s0 = int_to_ptr.vmem [resolvable:$true] %s213_s0  ;;  %s48_s19 = int_to_ptr.vmem [resolvable:$true] %s47_s19 }
  0x2e   :  { %219 = dma.hbm_to_vmem [thread:$0]  %s212_s20, 2048, %s214_s0, [#allocation24], %s1106_s29, %s1106_s29, %s1107_s6  }
  0x2f   :  { %s1389_s14 = sld [smem:[#allocation41_spill]]  ;;  %s1112_s9 = smov [#allocation7]  }
  0x30   :  { %s45_s5 = sshll.u32 %s1388_s15, 4  ;;  %s1390_s16 = sld [smem:[#allocation43_spill]]  ;;  %s46_s5 = int_to_ptr.hbm [resolvable:$true] %s45_s5 }
  0x31   :  { %50 = dma.hbm_to_vmem [thread:$0]  %s46_s5, 128, %s48_s19, [#allocation3]  }
  0x32   :  { %s69_s27 = sshll.u32 %s1112_s9, 4  ;;  %s1113_s4 = smov [#allocation10]   ;;  %s70_s27 = int_to_ptr.vmem [resolvable:$true] %s69_s27 }
  0x33   :  { %s91_s20 = sshll.u32 %s1113_s4, 4  ;;  %s1391_s15 = sld [smem:[#allocation45_spill]]  ;;  %s92_s20 = int_to_ptr.vmem [resolvable:$true] %s91_s20 }
  0x34   :  { %s1392_s2 = sld [smem:[#allocation48_spill]]  ;;  %s1114_s7 = smov [#allocation13]  }
  0x35   :  { %s67_s3 = sshll.u32 %s1389_s14, 4  ;;  %s113_s30 = sshll.u32 %s1114_s7, 4  ;;  %s68_s3 = int_to_ptr.hbm [resolvable:$true] %s67_s3  ;;  %s114_s30 = int_to_ptr.vmem [resolvable:$true] %s113_s30 }
  0x36   :  { %s89_s1 = sshll.u32 %s1390_s16, 4  ;;  %s1115_s14 = smov [#allocation16]   ;;  %s90_s1 = int_to_ptr.hbm [resolvable:$true] %s89_s1 }
  0x37   :  { %72 = dma.hbm_to_vmem [thread:$0]  %s68_s3, 128, %s70_s27, [#allocation6]  }
  0x38   :  { %94 = dma.hbm_to_vmem [thread:$0]  %s90_s1, 128, %s92_s20, [#allocation9]  }
  0x39   :  { %s111_s10 = sshll.u32 %s1391_s15, 4  ;;  %s138_s3 = sshll.u32 %s1115_s14, 4  ;;  %s112_s10 = int_to_ptr.hbm [resolvable:$true] %s111_s10  ;;  %s139_s3 = int_to_ptr.vmem [resolvable:$true] %s138_s3 }
  0x3a   :  { %s136_s19 = sshll.u32 %s1392_s2, 4  ;;  %s166_s16 = sshll.u32 %s1361_s13, 4  ;;  %s137_s19 = int_to_ptr.hbm [resolvable:$true] %s136_s19  ;;  %s167_s16 = int_to_ptr.hbm [resolvable:$true] %s166_s16 }
  0x3b   :  { %116 = dma.hbm_to_vmem [thread:$0]  %s112_s10, 128, %s114_s30, [#allocation12]  }
  0x3c   :  { %144 = dma.hbm_to_vmem [thread:$0]  %s137_s19, 2048, %s139_s3, [#allocation15], %s1106_s29, %s1106_s29, %s1107_s6  }
  0x3d   :  { %s196_s27 = sshll.u32 %s1365_s17, 4  ;;  %s1116_s4 = smov [#allocation19]   ;;  %s197_s27 = int_to_ptr.hbm [resolvable:$true] %s196_s27 }
  0x3e   :  { %s168_s20 = sshll.u32 %s1116_s4, 4  ;;  %s1117_s11 = smov [#allocation22]   ;;  %s169_s20 = int_to_ptr.vmem [resolvable:$true] %s168_s20 }
  0x3f   :  { %174 = dma.hbm_to_vmem [thread:$0]  %s167_s16, 2048, %s169_s20, [#allocation18], %s1106_s29, %s1106_s29, %s1107_s6  }
  0x40   :  { %s198_s13 = sshll.u32 %s1117_s11, 4  ;;  %s226_s10 = sshll.u32 %s1369_s21, 4  ;;  %s199_s13 = int_to_ptr.vmem [resolvable:$true] %s198_s13  ;;  %s227_s10 = int_to_ptr.hbm [resolvable:$true] %s226_s10 }
  0x41   :  { %204 = dma.hbm_to_vmem [thread:$0]  %s197_s27, 2048, %s199_s13, [#allocation21], %s1106_s29, %s1106_s29, %s1107_s6  }
  0x42   :  { %s241_s5 = sshll.u32 %s1371_s23, 4  ;;  %s1118_s2 = smov [#allocation25]   ;;  %s242_s5 = int_to_ptr.hbm [resolvable:$true] %s241_s5 }
  0x43   :  { %s228_s19 = sshll.u32 %s1118_s2, 4  ;;  %s1119_s7 = smov [#allocation26]   ;;  %s229_s19 = int_to_ptr.vmem [resolvable:$true] %s228_s19 }
  0x44   :  { %234 = dma.hbm_to_vmem [thread:$0]  %s227_s10, 2048, %s229_s19, [#allocation24], %s1106_s29, %s1106_s29, %s1107_s6  }
  0x45   :  { %s243_s21 = sshll.u32 %s1119_s7, 4  ;;  %s244_s21 = int_to_ptr.vmem [resolvable:$true] %s243_s21 }
  0x46   :  { %249 = dma.hbm_to_vmem [thread:$0]  %s242_s5, 2048, %s244_s21, [#allocation27], %s1106_s29, %s1106_s29, %s1107_s6  }
  0x47   :  { %1082 = dma.done.wait [#allocation3], 128  }
  0x48   :  { %1083 = vsyncadd [#allocation3], 4294967168 }
  0x49   :  { %1084 = dma.done.wait [#allocation6], 256  }
  0x4a   :  { %1085 = vsyncadd [#allocation6], 4294967040 }
  0x4b   :  { %1086 = dma.done.wait [#allocation9], 256  }
  0x4c   :  { %1087 = vsyncadd [#allocation9], 4294967040 }
  0x4d   :  { %1088 = dma.done.wait [#allocation12], 256  }
  0x4e   :  { %1089 = vsyncadd [#allocation12], 4294967040 }
  0x4f   :  { %1090 = dma.done.wait [#allocation15], 4096  }
  0x50   :  { %1091 = vsyncadd [#allocation15], 4294963200 }
  0x51   :  { %1092 = dma.done.wait [#allocation18], 4096  }
  0x52   :  { %1093 = vsyncadd [#allocation18], 4294963200 }
  0x53   :  { %1094 = dma.done.wait [#allocation21], 4096  }
  0x54   :  { %1095 = vsyncadd [#allocation21], 4294963200 }
  0x55   :  { %1096 = dma.done.wait [#allocation24], 4096  }
  0x56   :  { %1097 = vsyncadd [#allocation24], 4294963200 }
  0x57   :  { %1098 = dma.done.wait [#allocation27], 2048  }
  0x58   :  { %1099 = vsyncadd [#allocation27], 4294965248  ;;  %v336_v0 = vld [vmem:[#allocation14 + $0x78] sm:$0xff]  ;;  %v335_v1 = vld [vmem:[#allocation14 + $0x70] sm:$0xff]  ;;  %s1393_s6 = sld [smem:[#allocation47_spill]]  ;;  %vm361_vm0 = vcmask 64512  }
  0x59   :  { %v400_v2 = vld [vmem:[#allocation17 + $0x78] sm:$0xff]  ;;  %341 = vmatpush.msra.mxu0 %v336_v0  ;;  %v399_v3 = vld [vmem:[#allocation17 + $0x70] sm:$0xff]  ;;  %v334_v4 = vld [vmem:[#allocation14 + $0x68] sm:$0xff]  ;;  %s628_s4 = sshll.u32 %s1373_s25, 4  ;;  %s629_s4 = int_to_ptr.hbm [resolvable:$true] %s628_s4 }
  0x5a   :  { %405 = vmatpush.msra.mxu2 %v400_v2  ;;  %v398_v5 = vld [vmem:[#allocation17 + $0x68] sm:$0xff]  ;;  %v333_v6 = vld [vmem:[#allocation14 + $0x60] sm:$0xff]  ;;  %v332_v8 = vld [vmem:[#allocation14 + $0x58] sm:$0xff] }
  0x5b   :  { %342 = vmatpush.msra.mxu0 %v335_v1  ;;  %v397_v7 = vld [vmem:[#allocation17 + $0x60] sm:$0xff]  ;;  %v396_v9 = vld [vmem:[#allocation17 + $0x58] sm:$0xff]  ;;  %v331_v10 = vld [vmem:[#allocation14 + $0x50] sm:$0xff] }
  0x5c   :  { %406 = vmatpush.msra.mxu2 %v399_v3  ;;  %v395_v11 = vld [vmem:[#allocation17 + $0x50] sm:$0xff]  ;;  %v330_v12 = vld [vmem:[#allocation14 + $0x48] sm:$0xff]  ;;  %v329_v13 = vld [vmem:[#allocation14 + $0x40] sm:$0xff] }
  0x5d   :  { %343 = vmatpush.msra.mxu0 %v334_v4  ;;  %v394_v14 = vld [vmem:[#allocation17 + $0x48] sm:$0xff]  ;;  %v393_v15 = vld [vmem:[#allocation17 + $0x40] sm:$0xff]  ;;  %v328_v16 = vld [vmem:[#allocation14 + $0x38] sm:$0xff] }
  0x5e   :  { %407 = vmatpush.msra.mxu2 %v398_v5  ;;  %v392_v17 = vld [vmem:[#allocation17 + $0x38] sm:$0xff]  ;;  %v327_v18 = vld [vmem:[#allocation14 + $0x30] sm:$0xff]  ;;  %v326_v20 = vld [vmem:[#allocation14 + $0x28] sm:$0xff] }
  0x5f   :  { %344 = vmatpush.msra.mxu0 %v333_v6  ;;  %v391_v19 = vld [vmem:[#allocation17 + $0x30] sm:$0xff]  ;;  %v390_v21 = vld [vmem:[#allocation17 + $0x28] sm:$0xff]  ;;  %v325_v22 = vld [vmem:[#allocation14 + $0x20] sm:$0xff] }
  0x60   :  { %408 = vmatpush.msra.mxu2 %v397_v7  ;;  %v389_v23 = vld [vmem:[#allocation17 + $0x20] sm:$0xff]  ;;  %v324_v24 = vld [vmem:[#allocation14 + $0x18] sm:$0xff]  ;;  %v323_v26 = vld [vmem:[#allocation14 + $0x10] sm:$0xff] }
  0x61   :  { %345 = vmatpush.msra.mxu0 %v332_v8  ;;  %v388_v25 = vld [vmem:[#allocation17 + $0x18] sm:$0xff]  ;;  %v387_v27 = vld [vmem:[#allocation17 + $0x10] sm:$0xff]  ;;  %v322_v28 = vld [vmem:[#allocation14 + $0x8] sm:$0xff] }
  0x62   :  { %409 = vmatpush.msra.mxu2 %v396_v9  ;;  %v386_v29 = vld [vmem:[#allocation17 + $0x8] sm:$0xff]  ;;  %v321_v30 = vld [vmem:[#allocation14] sm:$0xff]  ;;  %v469_v33 = vld [vmem:[#allocation22 + $0x78] sm:$0xff] }
  0x63   :  { %346 = vmatpush.msra.mxu0 %v331_v10  ;;  %v385_v31 = vld [vmem:[#allocation17] sm:$0xff]  ;;  %v320_v32 = vld [vmem:[#allocation10] sm:$0xff]  ;;  %v468_v34 = vld [vmem:[#allocation22 + $0x70] sm:$0xff]  ;;  %474 = vmatpush.msra.mxu1 %v469_v33 }
  0x64   :  { %410 = vmatpush.msra.mxu2 %v395_v11  ;;  %v467_v35 = vld [vmem:[#allocation22 + $0x68] sm:$0xff]  ;;  %v466_v36 = vld [vmem:[#allocation22 + $0x60] sm:$0xff]  ;;  %v465_v37 = vld [vmem:[#allocation22 + $0x58] sm:$0xff] }
  0x65   :  { %347 = vmatpush.msra.mxu0 %v330_v12  ;;  %475 = vmatpush.msra.mxu1 %v468_v34  ;;  %v464_v38 = vld [vmem:[#allocation22 + $0x50] sm:$0xff]  ;;  %v463_v39 = vld [vmem:[#allocation22 + $0x48] sm:$0xff]  ;;  %v462_v40 = vld [vmem:[#allocation22 + $0x40] sm:$0xff] }
  0x66   :  { %411 = vmatpush.msra.mxu2 %v394_v14  ;;  %v461_v41 = vld [vmem:[#allocation22 + $0x38] sm:$0xff]  ;;  %v460_v42 = vld [vmem:[#allocation22 + $0x30] sm:$0xff]  ;;  %v669_v43 = vld [vmem:[%s1393_s6] ss:$0 sm:$0xff] }
  0x67   :  { %348 = vmatpush.msra.mxu0 %v329_v13  ;;  %476 = vmatpush.msra.mxu1 %v467_v35  ;;  %v459_v44 = vld [vmem:[#allocation22 + $0x28] sm:$0xff]  ;;  %v458_v46 = vld [vmem:[#allocation22 + $0x20] sm:$0xff]  ;;  %v457_v49 = vld [vmem:[#allocation22 + $0x18] sm:$0xff] }
  0x68   :  { %412 = vmatpush.msra.mxu2 %v393_v15  ;;  %v316_v48 = vld [vmem:[#allocation2] sm:$0xff]  ;;  %v456_v51 = vld [vmem:[#allocation22 + $0x10] sm:$0xff]  ;;  %v509_v54 = vld [vmem:[#allocation25 + $0x78] sm:$0xff] }
  0x69   :  { %349 = vmatpush.msra.mxu0 %v328_v16  ;;  %477 = vmatpush.msra.mxu1 %v466_v36  ;;  %v670_v50 = vld [vmem:[%s1360_s12] ss:$0 sm:$0xff]  ;;  %v318_v55 = vld [vmem:[#allocation7] sm:$0xff]  ;;  %v508_v56 = vld [vmem:[#allocation25 + $0x70] sm:$0xff] }
  0x6a   :  { %413 = vmatpush.msra.mxu2 %v392_v17  ;;  %v507_v57 = vld [vmem:[#allocation25 + $0x68] sm:$0xff]  ;;  %v506_v58 = vld [vmem:[#allocation25 + $0x60] sm:$0xff]  ;;  %v505_v59 = vld [vmem:[#allocation25 + $0x58] sm:$0xff] }
  0x6b   :  { %350 = vmatpush.msra.mxu0 %v327_v18  ;;  %478 = vmatpush.msra.mxu1 %v465_v37  ;;  %v504_v60 = vld [vmem:[#allocation25 + $0x50] sm:$0xff]  ;;  %v503_v61 = vld [vmem:[#allocation25 + $0x48] sm:$0xff]  ;;  %v502_v62 = vld [vmem:[#allocation25 + $0x40] sm:$0xff] }
  0x6c   :  { %414 = vmatpush.msra.mxu2 %v391_v19  ;;  %v501_v63 = vld [vmem:[#allocation25 + $0x38] sm:$0xff]  ;;  %v500_v0 = vld [vmem:[#allocation25 + $0x30] sm:$0xff]  ;;  %v455_v1 = vld [vmem:[#allocation22 + $0x8] sm:$0xff] }
  0x6d   :  { %351 = vmatpush.msra.mxu0 %v326_v20  ;;  %479 = vmatpush.msra.mxu1 %v464_v38  ;;  %v499_v2 = vld [vmem:[#allocation25 + $0x28] sm:$0xff]  ;;  %v454_v3 = vld [vmem:[#allocation22] sm:$0xff]  ;;  %v497_v5 = vld [vmem:[#allocation25 + $0x18] sm:$0xff] }
  0x6e   :  { %415 = vmatpush.msra.mxu2 %v390_v21  ;;  %v498_v4 = vld [vmem:[#allocation25 + $0x20] sm:$0xff]  ;;  %v496_v6 = vld [vmem:[#allocation25 + $0x10] sm:$0xff]  ;;  %v495_v7 = vld [vmem:[#allocation25 + $0x8] sm:$0xff] }
  0x6f   :  { %352 = vmatpush.msra.mxu0 %v325_v22  ;;  %480 = vmatpush.msra.mxu1 %v463_v39  ;;  %v494_v8 = vld [vmem:[#allocation25] sm:$0xff]  ;;  %v595_v15 = vld [vmem:[#allocation26 + $0x78] sm:$0xff]  ;;  %v594_v16 = vld [vmem:[#allocation26 + $0x70] sm:$0xff] }
  0x70   :  { %416 = vmatpush.msra.mxu2 %v389_v23  ;;  %v593_v17 = vld [vmem:[#allocation26 + $0x68] sm:$0xff]  ;;  %v592_v18 = vld [vmem:[#allocation26 + $0x60] sm:$0xff]  ;;  %v591_v19 = vld [vmem:[#allocation26 + $0x58] sm:$0xff] }
  0x71   :  { %353 = vmatpush.msra.mxu0 %v324_v24  ;;  %481 = vmatpush.msra.mxu1 %v462_v40  ;;  %v590_v20 = vld [vmem:[#allocation26 + $0x50] sm:$0xff]  ;;  %v589_v21 = vld [vmem:[#allocation26 + $0x48] sm:$0xff]  ;;  %v588_v23 = vld [vmem:[#allocation26 + $0x40] sm:$0xff] }
  0x72   :  { %417 = vmatpush.msra.mxu2 %v388_v25  ;;  %v671_v22 = vld [vmem:[%s1366_s18] ss:$0 sm:$0xff]  ;;  %v587_v25 = vld [vmem:[#allocation26 + $0x38] sm:$0xff]  ;;  %v319_v36 = vld [vmem:[#allocation8] sm:$0xff] }
  0x73   :  { %354 = vmatpush.msra.mxu0 %v323_v26  ;;  %482 = vmatpush.msra.mxu1 %v461_v41  ;;  %v672_v33 = vld [vmem:[%s1370_s22] ss:$0 sm:$0xff]  ;;  %v580_v38 = vld [vmem:[#allocation26] sm:$0xff]  ;;  %s1120_s22 = smov [#allocation28]  }
  0x74   :  { %418 = vmatpush.msra.mxu2 %v387_v27  ;;  %v317_v27 = vld [vmem:[#allocation5] sm:$0xff]  ;;  %v581_v37 = vld [vmem:[#allocation26 + $0x8] sm:$0xff]  ;;  %s626_s1 = sshll.u32 %s1120_s22, 4  ;;  %s627_s1 = int_to_ptr.vmem [resolvable:$true] %s626_s1 }
  0x75   :  { %355 = vmatpush.msra.mxu0 %v322_v28  ;;  %483 = vmatpush.msra.mxu1 %v460_v42  ;;  %v586_v28 = vld [vmem:[#allocation26 + $0x30] sm:$0xff]  ;;  %v673_v42 = vld [vmem:[%s1372_s24] ss:$0 sm:$0xff] }
  0x76   :  { %419 = vmatpush.msra.mxu2 %v386_v29  ;;  %v585_v29 = vld [vmem:[#allocation26 + $0x28] sm:$0xff] }
  0x77   :  { %356 = vmatpush.msra.mxu0 %v321_v30  ;;  %484 = vmatpush.msra.mxu1 %v459_v44  ;;  %v584_v30 = vld [vmem:[#allocation26 + $0x20] sm:$0xff] }
  0x78   :  { %420 = vmatpush.msra.mxu2 %v385_v31  ;;  %357 = vmatmul.f32.vlgmr.msra.gmra.mxu0 %v320_v32  ;;  %v583_v31 = vld [vmem:[#allocation26 + $0x18] sm:$0xff] }
  0x79   :  { %421 = vmatmul.f32.vlgmr.msra.gmra.mxu2 %v320_v32  ;;  %485 = vmatpush.msra.mxu1 %v458_v46  ;;  %v582_v32 = vld [vmem:[#allocation26 + $0x10] sm:$0xff] }
  0x7b   :  { %486 = vmatpush.msra.mxu1 %v457_v49 }
  0x7d   :  { %487 = vmatpush.msra.mxu1 %v456_v51 }
  0x7f   :  { %488 = vmatpush.msra.mxu1 %v455_v1 }
  0x81   :  { %489 = vmatpush.msra.mxu1 %v454_v3 }
  0x83   :  { %600 = vmatpush.msrb.mxu1 %v595_v15 }
  0x85   :  { %601 = vmatpush.msrb.mxu1 %v594_v16 }
  0x87   :  { %602 = vmatpush.msrb.mxu1 %v593_v17 }
  0x89   :  { %603 = vmatpush.msrb.mxu1 %v592_v18 }
  0x8b   :  { %604 = vmatpush.msrb.mxu1 %v591_v19 }
  0x8d   :  { %605 = vmatpush.msrb.mxu1 %v590_v20 }
  0x8f   :  { %606 = vmatpush.msrb.mxu1 %v589_v21 }
  0x91   :  { %607 = vmatpush.msrb.mxu1 %v588_v23 }
  0x93   :  { %608 = vmatpush.msrb.mxu1 %v587_v25 }
  0x95   :  { %609 = vmatpush.msrb.mxu1 %v586_v28 }
  0x97   :  { %610 = vmatpush.msrb.mxu1 %v585_v29 }
  0x99   :  { %611 = vmatpush.msrb.mxu1 %v584_v30 }
  0x9b   :  { %612 = vmatpush.msrb.mxu1 %v583_v31 }
  0x9d   :  { %613 = vmatpush.msrb.mxu1 %v582_v32 }
  0x9f   :  { %614 = vmatpush.msrb.mxu1 %v581_v37 }
  0xa1   :  { %615 = vmatpush.msrb.mxu1 %v580_v38 }
  0xf5   :  { %v358_v45 = vpop.f32.mrf.mxu0 }
  0xf6   :  { %v359_v47 = vadd.f32 %v669_v43, %v358_v45 }
  0xf8   :  { %380 = vmatpush.msra.mxu3 %v359_v47 }
  0xf9   :  { %646 = vmatmul.msk.f32.vlgmr.msra.gmra.mxu3 %vm361_vm0, %v316_v48 }
  0xfc   :  { %v422_v52 = vpop.f32.mrf.mxu2 }
  0xfd   :  { %v423_v53 = vadd.f32 %v670_v50, %v422_v52 }
  0xff   :  { %443 = vmatpush.msrb.mxu3 %v423_v53 }
 0x101   :  { %514 = vmatpush.msra.mxu3 %v509_v54 }
 0x102   :  { %647 = vmatmul.msk.f32.vlgmr.msrb.gmra.mxu3 %vm361_vm0, %v318_v55 }
 0x103   :  { %515 = vmatpush.msra.mxu3 %v508_v56 }
 0x105   :  { %516 = vmatpush.msra.mxu3 %v507_v57 }
 0x107   :  { %517 = vmatpush.msra.mxu3 %v506_v58 }
 0x109   :  { %518 = vmatpush.msra.mxu3 %v505_v59 }
 0x10b   :  { %519 = vmatpush.msra.mxu3 %v504_v60 }
 0x10d   :  { %520 = vmatpush.msra.mxu3 %v503_v61 }
 0x10f   :  { %521 = vmatpush.msra.mxu3 %v502_v62 }
 0x111   :  { %522 = vmatpush.msra.mxu3 %v501_v63 }
 0x113   :  { %523 = vmatpush.msra.mxu3 %v500_v0 }
 0x115   :  { %524 = vmatpush.msra.mxu3 %v499_v2 }
 0x117   :  { %525 = vmatpush.msra.mxu3 %v498_v4 }
 0x119   :  { %526 = vmatpush.msra.mxu3 %v497_v5 }
 0x11b   :  { %527 = vmatpush.msra.mxu3 %v496_v6 }
 0x11d   :  { %528 = vmatpush.msra.mxu3 %v495_v7 }
 0x11f   :  { %529 = vmatpush.msra.mxu3 %v494_v8 }
 0x17c   :  { %v382_v9 = vpop.f32.mrf.mxu3 }
 0x17d   :  { %v449_v10 = vmul.f32 0.01, %v382_v9  ;;  %vm448_vm1 = vcmp.ge.f32.partialorder %v382_v9, 0.0 }
 0x17f   :  { %v450_v11 = vsel %vm448_vm1, %v382_v9, %v449_v10 }
 0x180   :  { %490 = vmatmul.f32.vlgmr.msra.gmra.mxu1 %v450_v11 }
 0x185   :  { %v445_v12 = vpop.f32.mrf.mxu3 }
 0x186   :  { %vm451_vm2 = vcmp.ge.f32.partialorder %v445_v12, 0.0  ;;  %v452_v13 = vmul.f32 0.01, %v445_v12 }
 0x188   :  { %v453_v14 = vsel %vm451_vm2, %v445_v12, %v452_v13 }
 0x189   :  { %530 = vmatmul.f32.vlgmr.msra.gmra.mxu3 %v453_v14 }
 0x1fd   :  { %v491_v24 = vpop.f32.mrf.mxu1 }
 0x1fe   :  { %v492_v26 = vadd.f32 %v671_v22, %v491_v24 }
 0x200   :  { %575 = vmatpush.msrb.mxu2 %v492_v26 }
 0x201   :  { %649 = vmatmul.msk.f32.vlgmr.msrb.gmra.mxu2 %vm361_vm0, %v317_v27 }
 0x20c   :  { %v531_v34 = vpop.f32.mrf.mxu3 }
 0x20d   :  { %v532_v35 = vadd.f32 %v672_v33, %v531_v34 }
 0x20f   :  { %552 = vmatpush.msrb.mxu0 %v532_v35 }
 0x210   :  { %648 = vmatmul.msk.f32.vlgmr.msrb.gmra.mxu0 %vm361_vm0, %v319_v36 }
 0x284   :  { %v577_v39 = vpop.f32.mrf.mxu2 }
 0x28d   :  { %v554_v40 = vpop.f32.mrf.mxu0 }
 0x28e   :  { %v578_v41 = vadd.f32 %v577_v39, %v554_v40 }
 0x290   :  { %616 = vmatmul.f32.vlgmr.msrb.gmra.mxu1 %v578_v41 }
 0x30d   :  { %v617_v43 = vpop.f32.mrf.mxu1 }
 0x30e   :  { %v618_v44 = vadd.f32 %v673_v42, %v617_v43 }
 0x310   :  { %620 = vst [vmem:[#allocation28] sm:$0xff] %v618_v44 }
 0x311   :  { %631 = dma.vmem_to_hbm [thread:$0]  %s627_s1, 128, %s629_s4, [#allocation4]  }
 0x312   :  { %1100 = dma.done.wait [#allocation4], 128  }
 0x313   :  { %1101 = vsyncadd [#allocation4], 4294967168 }
 0x314   :  { %636 = vsyncpa [#allocation3], 1 }
 0x315   :  { %637 = vsyncpa [#allocation6], 1 }
 0x316   :  { %638 = vsyncpa [#allocation9], 1 }
 0x317   :  { %639 = vsyncpa [#allocation12], 1 }
 0x318   :  { %640 = vsyncpa [#allocation15], 1 }
 0x319   :  { %641 = vsyncpa [#allocation18], 1 }
 0x31a   :  { %642 = vsyncpa [#allocation21], 1 }
 0x31b   :  { %643 = vsyncpa [#allocation24], 1 }
 0x31c   :  { %644 = vsyncpa [#allocation27], 1 }
 0x31d   :  { %645 = vsyncpa [#allocation4], 1 }

</bundles_post_ra>
